<compile_context>
chip_gen: v6e
topology: v6e:2x2x1
jax: 0.10.0
libtpu: 0.0.40
codegen_flags: <defaults>
</compile_context>

<pallas_src>
import functools
import math

import jax
import jax.numpy as jnp
from jax import lax
from jax.experimental import pallas as pl
from jax.experimental.pallas import tpu as pltpu


def _pool_kernel(x_ref, p_ref, *, c_chunk, inv_c):
    """Channel mean/max pooling, accumulated across the C grid axis.

    x_ref: (c_chunk, tile_h, W) input slab (native dtype).
    p_ref: (2, tile_h, W) f32 output block, resident across the C axis.
           p_ref[0] accumulates the channel sum (scaled to the mean at the
           last C step), p_ref[1] holds the running channel max.
    """
    c_step = pl.program_id(2)

    @pl.when(c_step == 0)
    def _init():
        p_ref[0, :, :] = jnp.zeros(p_ref.shape[1:], jnp.float32)
        p_ref[1, :, :] = jnp.full(p_ref.shape[1:], -jnp.inf, jnp.float32)

    def body(i, carry):
        xi = x_ref[i, :, :].astype(jnp.float32)      # one channel slice at a time
        p_ref[0, :, :] = p_ref[0, :, :] + xi
        p_ref[1, :, :] = jnp.maximum(p_ref[1, :, :], xi)
        return carry

    lax.fori_loop(0, c_chunk, body, 0, unroll=True)

    @pl.when(c_step == pl.num_programs(2) - 1)
    def _finalize():
        p_ref[0, :, :] = p_ref[0, :, :] * inv_c


def _conv_sigmoid_kernel(w_ref, p_ref, o_ref, sh_ref, *, ksize, pad, row_tile):
    """k x k conv over the 2 pooled maps + sigmoid, for one batch element.

    w_ref:  (2*k*k,) f32 flattened conv weight in SMEM.
    p_ref:  (2, Hr + 2*pad, W + 2*pad) f32 zero-padded pooled maps (avg, max).
    o_ref:  (Hr, W) attention-map output block.
    sh_ref: (2, row_tile + 2*pad, W) f32 scratch holding the dj-lane-shifted
            window of the current row tile.
    """
    kk = ksize * ksize
    hr, w = o_ref.shape
    n_row_tiles = hr // row_tile

    # Hoist all 2*k*k scalar weight reads out of the tap loops (SMEM -> sregs).
    w_avg = [[w_ref[di * ksize + dj] for dj in range(ksize)] for di in range(ksize)]
    w_max = [[w_ref[kk + di * ksize + dj] for dj in range(ksize)] for di in range(ksize)]

    def row_tile_body(t, carry):
        r0 = pl.multiple_of(t * row_tile, row_tile)
        acc = jnp.zeros((row_tile, w), jnp.float32)          # stays in registers
        for dj in range(ksize):                              # static, unrolled
            # One lane-shifted copy per dj (the only cross-lane work); the di
            # taps below become plain sublane-offset loads from VMEM scratch.
            sh_ref[0, :, :] = p_ref[0, pl.ds(r0, row_tile + 2 * pad), pl.ds(dj, w)]
            sh_ref[1, :, :] = p_ref[1, pl.ds(r0, row_tile + 2 * pad), pl.ds(dj, w)]
            for di in range(ksize):                          # static, unrolled
                a_tap = sh_ref[0, pl.ds(di, row_tile), :]
                m_tap = sh_ref[1, pl.ds(di, row_tile), :]
                acc = acc + w_avg[di][dj] * a_tap + w_max[di][dj] * m_tap
        out = 1.0 / (1.0 + jnp.exp(-acc))                    # exp on the EUP
        o_ref[pl.ds(r0, row_tile), :] = out.astype(o_ref.dtype)
        return carry

    lax.fori_loop(0, n_row_tiles, row_tile_body, 0)


def _largest_divisor_leq(value, cap):
    for d in range(min(value, cap), 0, -1):
        if value % d == 0:
            return d
    return 1


def spatial_attention_forward(x: jax.Array, weight: jax.Array, *, kernel_size: int = 7) -> jax.Array:
    """SpatialAttention forward: sigmoid(conv_k([mean_C(x); max_C(x)])).

    Args:
      x:      (N, C, H, W) input (any float dtype; streamed in native dtype).
      weight: (1, 2, k, k) conv weight (PyTorch Conv2d(2, 1, k, bias=False)).
    Returns:
      (N, 1, H, W) attention map in x.dtype.
    """
    assert kernel_size in (3, 7), "kernel size must be 3 or 7"
    pad = 3 if kernel_size == 7 else 1
    n, c, h, w = x.shape
    assert weight.shape == (1, 2, kernel_size, kernel_size)

    w_flat = weight.reshape(-1).astype(jnp.float32)          # (2*k*k,) -> SMEM
    itemsize = jnp.dtype(x.dtype).itemsize

    # ---- Kernel 1: channel mean / max pooling --------------------------------
    c_chunk = _largest_divisor_leq(c, 8)
    if h % 8 == 0:
        tile_h = (1 << 20) // max(1, c_chunk * w * itemsize)  # ~1 MiB x block
        tile_h = max(8, min(h, (tile_h // 8) * 8))
    else:
        tile_h = h            # full-H block satisfies the (8, 128) block rule
    n_h = pl.cdiv(h, tile_h)
    n_c = c // c_chunk

    pooled = pl.pallas_call(
        functools.partial(_pool_kernel, c_chunk=c_chunk, inv_c=1.0 / c),
        out_shape=jax.ShapeDtypeStruct((n, 2, h, w), jnp.float32),
        grid=(n, n_h, n_c),
        in_specs=[
            pl.BlockSpec((None, c_chunk, tile_h, w), lambda b, i, j: (b, j, i, 0)),
        ],
        out_specs=pl.BlockSpec((None, 2, tile_h, w), lambda b, i, j: (b, 0, i, 0)),
        compiler_params=pltpu.CompilerParams(
            dimension_semantics=("parallel", "parallel", "arbitrary"),
            vmem_limit_bytes=32 * 1024 * 1024,
        ),
    )(x)

    # ---- Kernel 2: k x k conv over the 2 pooled maps + sigmoid ---------------
    row_tile = 8
    hr = ((h + row_tile - 1) // row_tile) * row_tile          # rows, mult of 8
    # Zero halo (and bottom round-up rows) added once in XLA on the tiny map.
    pooled_pad = jnp.pad(
        pooled, ((0, 0), (0, 0), (pad, pad + (hr - h)), (pad, pad)))

    in_block2 = 2 * (hr + 2 * pad) * (w + 2 * pad) * 4
    out_block2 = hr * w * itemsize
    sh_bytes = 2 * (row_tile + 2 * pad) * w * 4
    vmem2 = 2 * (in_block2 + out_block2) + sh_bytes + (4 << 20)

    att = pl.pallas_call(
        functools.partial(_conv_sigmoid_kernel, ksize=kernel_size, pad=pad,
                          row_tile=row_tile),
        out_shape=jax.ShapeDtypeStruct((n, 1, hr, w), x.dtype),
        grid=(n,),
        in_specs=[
            pl.BlockSpec(memory_space=pltpu.MemorySpace.SMEM),
            pl.BlockSpec((None, 2, hr + 2 * pad, w + 2 * pad),
                         lambda b: (b, 0, 0, 0)),
        ],
        out_specs=pl.BlockSpec((None, None, hr, w), lambda b: (b, 0, 0, 0)),
        scratch_shapes=[pltpu.VMEM((2, row_tile + 2 * pad, w), jnp.float32)],
        compiler_params=pltpu.CompilerParams(
            dimension_semantics=("parallel",),
            vmem_limit_bytes=max(32 * 1024 * 1024, int(vmem2)),
        ),
    )(w_flat, pooled_pad)

    return att[:, :, :h, :]


def _reference_spatial_attention(x, weight, *, kernel_size=7):
    """Pure-JAX reference matching the PyTorch module."""
    pad = 3 if kernel_size == 7 else 1
    avg = jnp.mean(x, axis=1, keepdims=True)
    mx = jnp.max(x, axis=1, keepdims=True)
    cat = jnp.concatenate([avg, mx], axis=1)                   # (N, 2, H, W)
    y = jax.lax.conv_general_dilated(
        cat, weight, window_strides=(1, 1),
        padding=((pad, pad), (pad, pad)),
        dimension_numbers=("NCHW", "OIHW", "NCHW"),
        precision=jax.lax.Precision.HIGHEST)
    return jax.nn.sigmoid(y)


if __name__ == "__main__":
    key = jax.random.PRNGKey(0)
    kx, kw = jax.random.split(key)

    N, C, H, W = 2, 4, 16, 16
    K = 7

    x = jax.random.normal(kx, (N, C, H, W), dtype=jnp.float32)
    # Conv2d(2, 1, 7, bias=False)-style weight (kaiming-uniform-like bounds).
    fan_in = 2 * K * K
    bound = 1.0 / math.sqrt(fan_in)
    weight = jax.random.uniform(kw, (1, 2, K, K), jnp.float32, -bound, bound)

    y = spatial_attention_forward(x, weight, kernel_size=K)
    y = jax.block_until_ready(y)

    y_ref = _reference_spatial_attention(x, weight, kernel_size=K)

    assert y.shape == (N, 1, H, W) and y.dtype == jnp.float32
    max_err = float(jnp.max(jnp.abs(y - y_ref)))
    assert max_err < 1e-5, f"max abs err = {max_err}"

    print("KERNEL_OK")
</pallas_src>

<mosaic_0001>
module attributes {stable_mosaic.version = 11 : i64} {
  func.func @_pool_kernel(%arg0: i32, %arg1: i32, %arg2: i32, %arg3: memref<1x4x16x16xf32, #tpu.memory_space<vmem>>, %arg4: memref<1x2x16x16xf32, #tpu.memory_space<vmem>>) attributes {dimension_semantics = [#tpu.dimension_semantics<parallel>, #tpu.dimension_semantics<parallel>, #tpu.dimension_semantics<arbitrary>], iteration_bounds = array<i64: 2, 1, 1>, scalar_prefetch = 0 : i64, scratch_operands = 0 : i64, tpu.core_type = #tpu.core_type<tc>, window_params = [{transform_indices = @transform_0, window_bounds = array<i64: 1, 4, 16, 16>}, {transform_indices = @transform_1, window_bounds = array<i64: 1, 2, 16, 16>}]} {
    %c0_i32 = arith.constant 0 : i32
    %0 = arith.cmpi eq, %arg2, %c0_i32 : i32
    %1 = arith.extui %0 : i1 to i32
    %c0_i32_0 = arith.constant 0 : i32
    %2 = arith.cmpi ne, %1, %c0_i32_0 : i32
    scf.if %2 {
      %cst = arith.constant 0.000000e+00 : f32
      %66 = vector.broadcast %cst : f32 to vector<16x16xf32>
      %c0_78 = arith.constant 0 : index
      %c0_79 = arith.constant 0 : index
      %c0_80 = arith.constant 0 : index
      %c0_81 = arith.constant 0 : index
      %67 = vector.load %arg4[%c0_78, %c0_79, %c0_80, %c0_81] : memref<1x2x16x16xf32, #tpu.memory_space<vmem>>, vector<1x1x16x16xf32>
      %68 = vector.shape_cast %67 : vector<1x1x16x16xf32> to vector<16x16xf32>
      %69 = vector.shape_cast %66 : vector<16x16xf32> to vector<1x1x16x16xf32>
      tpu.vector_store %arg4[%c0_78, %c0_79, %c0_80, %c0_81], %69 {strides = array<i32>} : memref<1x2x16x16xf32, #tpu.memory_space<vmem>>, vector<1x1x16x16xf32>,
      %cst_82 = arith.constant 0xFF800000 : f32
      %70 = vector.broadcast %cst_82 : f32 to vector<16x16xf32>
      %c0_83 = arith.constant 0 : index
      %c1_84 = arith.constant 1 : index
      %c0_85 = arith.constant 0 : index
      %c0_86 = arith.constant 0 : index
      %71 = vector.load %arg4[%c0_83, %c1_84, %c0_85, %c0_86] : memref<1x2x16x16xf32, #tpu.memory_space<vmem>>, vector<1x1x16x16xf32>
      %72 = vector.shape_cast %71 : vector<1x1x16x16xf32> to vector<16x16xf32>
      %73 = vector.shape_cast %70 : vector<16x16xf32> to vector<1x1x16x16xf32>
      tpu.vector_store %arg4[%c0_83, %c1_84, %c0_85, %c0_86], %73 {strides = array<i32>} : memref<1x2x16x16xf32, #tpu.memory_space<vmem>>, vector<1x1x16x16xf32>,
    } else {
    }
    %c0_i32_1 = arith.constant 0 : i32
    %c0 = arith.constant 0 : index
    %3 = arith.index_cast %c0_i32_1 : i32 to index
    %c0_2 = arith.constant 0 : index
    %c0_3 = arith.constant 0 : index
    %4 = vector.load %arg3[%c0, %3, %c0_2, %c0_3] : memref<1x4x16x16xf32, #tpu.memory_space<vmem>>, vector<1x1x16x16xf32>
    %5 = vector.shape_cast %4 : vector<1x1x16x16xf32> to vector<16x16xf32>
    %c0_4 = arith.constant 0 : index
    %c0_5 = arith.constant 0 : index
    %c0_6 = arith.constant 0 : index
    %c0_7 = arith.constant 0 : index
    %6 = vector.load %arg4[%c0_4, %c0_5, %c0_6, %c0_7] : memref<1x2x16x16xf32, #tpu.memory_space<vmem>>, vector<1x1x16x16xf32>
    %7 = vector.shape_cast %6 : vector<1x1x16x16xf32> to vector<16x16xf32>
    %8 = arith.addf %7, %5 : vector<16x16xf32>
    %c0_8 = arith.constant 0 : index
    %c0_9 = arith.constant 0 : index
    %c0_10 = arith.constant 0 : index
    %c0_11 = arith.constant 0 : index
    %9 = vector.load %arg4[%c0_8, %c0_9, %c0_10, %c0_11] : memref<1x2x16x16xf32, #tpu.memory_space<vmem>>, vector<1x1x16x16xf32>
    %10 = vector.shape_cast %9 : vector<1x1x16x16xf32> to vector<16x16xf32>
    %11 = vector.shape_cast %8 : vector<16x16xf32> to vector<1x1x16x16xf32>
    tpu.vector_store %arg4[%c0_8, %c0_9, %c0_10, %c0_11], %11 {strides = array<i32>} : memref<1x2x16x16xf32, #tpu.memory_space<vmem>>, vector<1x1x16x16xf32>,
    %c0_12 = arith.constant 0 : index
    %c1 = arith.constant 1 : index
    %c0_13 = arith.constant 0 : index
    %c0_14 = arith.constant 0 : index
    %12 = vector.load %arg4[%c0_12, %c1, %c0_13, %c0_14] : memref<1x2x16x16xf32, #tpu.memory_space<vmem>>, vector<1x1x16x16xf32>
    %13 = vector.shape_cast %12 : vector<1x1x16x16xf32> to vector<16x16xf32>
    %14 = arith.maximumf %13, %5 : vector<16x16xf32>
    %c0_15 = arith.constant 0 : index
    %c1_16 = arith.constant 1 : index
    %c0_17 = arith.constant 0 : index
    %c0_18 = arith.constant 0 : index
    %15 = vector.load %arg4[%c0_15, %c1_16, %c0_17, %c0_18] : memref<1x2x16x16xf32, #tpu.memory_space<vmem>>, vector<1x1x16x16xf32>
    %16 = vector.shape_cast %15 : vector<1x1x16x16xf32> to vector<16x16xf32>
    %17 = vector.shape_cast %14 : vector<16x16xf32> to vector<1x1x16x16xf32>
    tpu.vector_store %arg4[%c0_15, %c1_16, %c0_17, %c0_18], %17 {strides = array<i32>} : memref<1x2x16x16xf32, #tpu.memory_space<vmem>>, vector<1x1x16x16xf32>,
    %c1_i32 = arith.constant 1 : i32
    %c0_19 = arith.constant 0 : index
    %18 = arith.index_cast %c1_i32 : i32 to index
    %c0_20 = arith.constant 0 : index
    %c0_21 = arith.constant 0 : index
    %19 = vector.load %arg3[%c0_19, %18, %c0_20, %c0_21] : memref<1x4x16x16xf32, #tpu.memory_space<vmem>>, vector<1x1x16x16xf32>
    %20 = vector.shape_cast %19 : vector<1x1x16x16xf32> to vector<16x16xf32>
    %c0_22 = arith.constant 0 : index
    %c0_23 = arith.constant 0 : index
    %c0_24 = arith.constant 0 : index
    %c0_25 = arith.constant 0 : index
    %21 = vector.load %arg4[%c0_22, %c0_23, %c0_24, %c0_25] : memref<1x2x16x16xf32, #tpu.memory_space<vmem>>, vector<1x1x16x16xf32>
    %22 = vector.shape_cast %21 : vector<1x1x16x16xf32> to vector<16x16xf32>
    %23 = arith.addf %22, %20 : vector<16x16xf32>
    %c0_26 = arith.constant 0 : index
    %c0_27 = arith.constant 0 : index
    %c0_28 = arith.constant 0 : index
    %c0_29 = arith.constant 0 : index
    %24 = vector.load %arg4[%c0_26, %c0_27, %c0_28, %c0_29] : memref<1x2x16x16xf32, #tpu.memory_space<vmem>>, vector<1x1x16x16xf32>
    %25 = vector.shape_cast %24 : vector<1x1x16x16xf32> to vector<16x16xf32>
    %26 = vector.shape_cast %23 : vector<16x16xf32> to vector<1x1x16x16xf32>
    tpu.vector_store %arg4[%c0_26, %c0_27, %c0_28, %c0_29], %26 {strides = array<i32>} : memref<1x2x16x16xf32, #tpu.memory_space<vmem>>, vector<1x1x16x16xf32>,
    %c0_30 = arith.constant 0 : index
    %c1_31 = arith.constant 1 : index
    %c0_32 = arith.constant 0 : index
    %c0_33 = arith.constant 0 : index
    %27 = vector.load %arg4[%c0_30, %c1_31, %c0_32, %c0_33] : memref<1x2x16x16xf32, #tpu.memory_space<vmem>>, vector<1x1x16x16xf32>
    %28 = vector.shape_cast %27 : vector<1x1x16x16xf32> to vector<16x16xf32>
    %29 = arith.maximumf %28, %20 : vector<16x16xf32>
    %c0_34 = arith.constant 0 : index
    %c1_35 = arith.constant 1 : index
    %c0_36 = arith.constant 0 : index
    %c0_37 = arith.constant 0 : index
    %30 = vector.load %arg4[%c0_34, %c1_35, %c0_36, %c0_37] : memref<1x2x16x16xf32, #tpu.memory_space<vmem>>, vector<1x1x16x16xf32>
    %31 = vector.shape_cast %30 : vector<1x1x16x16xf32> to vector<16x16xf32>
    %32 = vector.shape_cast %29 : vector<16x16xf32> to vector<1x1x16x16xf32>
    tpu.vector_store %arg4[%c0_34, %c1_35, %c0_36, %c0_37], %32 {strides = array<i32>} : memref<1x2x16x16xf32, #tpu.memory_space<vmem>>, vector<1x1x16x16xf32>,
    %c2_i32 = arith.constant 2 : i32
    %c0_38 = arith.constant 0 : index
    %33 = arith.index_cast %c2_i32 : i32 to index
    %c0_39 = arith.constant 0 : index
    %c0_40 = arith.constant 0 : index
    %34 = vector.load %arg3[%c0_38, %33, %c0_39, %c0_40] : memref<1x4x16x16xf32, #tpu.memory_space<vmem>>, vector<1x1x16x16xf32>
    %35 = vector.shape_cast %34 : vector<1x1x16x16xf32> to vector<16x16xf32>
    %c0_41 = arith.constant 0 : index
    %c0_42 = arith.constant 0 : index
    %c0_43 = arith.constant 0 : index
    %c0_44 = arith.constant 0 : index
    %36 = vector.load %arg4[%c0_41, %c0_42, %c0_43, %c0_44] : memref<1x2x16x16xf32, #tpu.memory_space<vmem>>, vector<1x1x16x16xf32>
    %37 = vector.shape_cast %36 : vector<1x1x16x16xf32> to vector<16x16xf32>
    %38 = arith.addf %37, %35 : vector<16x16xf32>
    %c0_45 = arith.constant 0 : index
    %c0_46 = arith.constant 0 : index
    %c0_47 = arith.constant 0 : index
    %c0_48 = arith.constant 0 : index
    %39 = vector.load %arg4[%c0_45, %c0_46, %c0_47, %c0_48] : memref<1x2x16x16xf32, #tpu.memory_space<vmem>>, vector<1x1x16x16xf32>
    %40 = vector.shape_cast %39 : vector<1x1x16x16xf32> to vector<16x16xf32>
    %41 = vector.shape_cast %38 : vector<16x16xf32> to vector<1x1x16x16xf32>
    tpu.vector_store %arg4[%c0_45, %c0_46, %c0_47, %c0_48], %41 {strides = array<i32>} : memref<1x2x16x16xf32, #tpu.memory_space<vmem>>, vector<1x1x16x16xf32>,
    %c0_49 = arith.constant 0 : index
    %c1_50 = arith.constant 1 : index
    %c0_51 = arith.constant 0 : index
    %c0_52 = arith.constant 0 : index
    %42 = vector.load %arg4[%c0_49, %c1_50, %c0_51, %c0_52] : memref<1x2x16x16xf32, #tpu.memory_space<vmem>>, vector<1x1x16x16xf32>
    %43 = vector.shape_cast %42 : vector<1x1x16x16xf32> to vector<16x16xf32>
    %44 = arith.maximumf %43, %35 : vector<16x16xf32>
    %c0_53 = arith.constant 0 : index
    %c1_54 = arith.constant 1 : index
    %c0_55 = arith.constant 0 : index
    %c0_56 = arith.constant 0 : index
    %45 = vector.load %arg4[%c0_53, %c1_54, %c0_55, %c0_56] : memref<1x2x16x16xf32, #tpu.memory_space<vmem>>, vector<1x1x16x16xf32>
    %46 = vector.shape_cast %45 : vector<1x1x16x16xf32> to vector<16x16xf32>
    %47 = vector.shape_cast %44 : vector<16x16xf32> to vector<1x1x16x16xf32>
    tpu.vector_store %arg4[%c0_53, %c1_54, %c0_55, %c0_56], %47 {strides = array<i32>} : memref<1x2x16x16xf32, #tpu.memory_space<vmem>>, vector<1x1x16x16xf32>,
    %c3_i32 = arith.constant 3 : i32
    %c0_57 = arith.constant 0 : index
    %48 = arith.index_cast %c3_i32 : i32 to index
    %c0_58 = arith.constant 0 : index
    %c0_59 = arith.constant 0 : index
    %49 = vector.load %arg3[%c0_57, %48, %c0_58, %c0_59] : memref<1x4x16x16xf32, #tpu.memory_space<vmem>>, vector<1x1x16x16xf32>
    %50 = vector.shape_cast %49 : vector<1x1x16x16xf32> to vector<16x16xf32>
    %c0_60 = arith.constant 0 : index
    %c0_61 = arith.constant 0 : index
    %c0_62 = arith.constant 0 : index
    %c0_63 = arith.constant 0 : index
    %51 = vector.load %arg4[%c0_60, %c0_61, %c0_62, %c0_63] : memref<1x2x16x16xf32, #tpu.memory_space<vmem>>, vector<1x1x16x16xf32>
    %52 = vector.shape_cast %51 : vector<1x1x16x16xf32> to vector<16x16xf32>
    %53 = arith.addf %52, %50 : vector<16x16xf32>
    %c0_64 = arith.constant 0 : index
    %c0_65 = arith.constant 0 : index
    %c0_66 = arith.constant 0 : index
    %c0_67 = arith.constant 0 : index
    %54 = vector.load %arg4[%c0_64, %c0_65, %c0_66, %c0_67] : memref<1x2x16x16xf32, #tpu.memory_space<vmem>>, vector<1x1x16x16xf32>
    %55 = vector.shape_cast %54 : vector<1x1x16x16xf32> to vector<16x16xf32>
    %56 = vector.shape_cast %53 : vector<16x16xf32> to vector<1x1x16x16xf32>
    tpu.vector_store %arg4[%c0_64, %c0_65, %c0_66, %c0_67], %56 {strides = array<i32>} : memref<1x2x16x16xf32, #tpu.memory_space<vmem>>, vector<1x1x16x16xf32>,
    %c0_68 = arith.constant 0 : index
    %c1_69 = arith.constant 1 : index
    %c0_70 = arith.constant 0 : index
    %c0_71 = arith.constant 0 : index
    %57 = vector.load %arg4[%c0_68, %c1_69, %c0_70, %c0_71] : memref<1x2x16x16xf32, #tpu.memory_space<vmem>>, vector<1x1x16x16xf32>
    %58 = vector.shape_cast %57 : vector<1x1x16x16xf32> to vector<16x16xf32>
    %59 = arith.maximumf %58, %50 : vector<16x16xf32>
    %c0_72 = arith.constant 0 : index
    %c1_73 = arith.constant 1 : index
    %c0_74 = arith.constant 0 : index
    %c0_75 = arith.constant 0 : index
    %60 = vector.load %arg4[%c0_72, %c1_73, %c0_74, %c0_75] : memref<1x2x16x16xf32, #tpu.memory_space<vmem>>, vector<1x1x16x16xf32>
    %61 = vector.shape_cast %60 : vector<1x1x16x16xf32> to vector<16x16xf32>
    %62 = vector.shape_cast %59 : vector<16x16xf32> to vector<1x1x16x16xf32>
    tpu.vector_store %arg4[%c0_72, %c1_73, %c0_74, %c0_75], %62 {strides = array<i32>} : memref<1x2x16x16xf32, #tpu.memory_space<vmem>>, vector<1x1x16x16xf32>,
    %c4_i32 = arith.constant 4 : i32
    %c0_i32_76 = arith.constant 0 : i32
    %63 = arith.cmpi eq, %arg2, %c0_i32_76 : i32
    %64 = arith.extui %63 : i1 to i32
    %c0_i32_77 = arith.constant 0 : i32
    %65 = arith.cmpi ne, %64, %c0_i32_77 : i32
    scf.if %65 {
      %c0_78 = arith.constant 0 : index
      %c0_79 = arith.constant 0 : index
      %c0_80 = arith.constant 0 : index
      %c0_81 = arith.constant 0 : index
      %66 = vector.load %arg4[%c0_78, %c0_79, %c0_80, %c0_81] : memref<1x2x16x16xf32, #tpu.memory_space<vmem>>, vector<1x1x16x16xf32>
      %67 = vector.shape_cast %66 : vector<1x1x16x16xf32> to vector<16x16xf32>
      %cst = arith.constant 2.500000e-01 : f32
      %68 = vector.broadcast %cst : f32 to vector<16x16xf32>
      %69 = arith.mulf %67, %68 : vector<16x16xf32>
      %c0_82 = arith.constant 0 : index
      %c0_83 = arith.constant 0 : index
      %c0_84 = arith.constant 0 : index
      %c0_85 = arith.constant 0 : index
      %70 = vector.load %arg4[%c0_82, %c0_83, %c0_84, %c0_85] : memref<1x2x16x16xf32, #tpu.memory_space<vmem>>, vector<1x1x16x16xf32>
      %71 = vector.shape_cast %70 : vector<1x1x16x16xf32> to vector<16x16xf32>
      %72 = vector.shape_cast %69 : vector<16x16xf32> to vector<1x1x16x16xf32>
      tpu.vector_store %arg4[%c0_82, %c0_83, %c0_84, %c0_85], %72 {strides = array<i32>} : memref<1x2x16x16xf32, #tpu.memory_space<vmem>>, vector<1x1x16x16xf32>,
    } else {
    }
    return
  }
  func.func @transform_0(%arg0: i32, %arg1: i32, %arg2: i32) -> (i32, i32, i32, i32) {
    %c0_i32 = arith.constant 0 : i32
    %c0_i32_0 = arith.constant 0 : i32
    return %arg0, %arg2, %arg1, %c0_i32 : i32, i32, i32, i32
  }
  func.func @transform_1(%arg0: i32, %arg1: i32, %arg2: i32) -> (i32, i32, i32, i32) {
    %c0_i32 = arith.constant 0 : i32
    %c0_i32_0 = arith.constant 0 : i32
    %c0_i32_1 = arith.constant 0 : i32
    return %arg0, %c0_i32, %arg1, %c0_i32_0 : i32, i32, i32, i32
  }
}

</mosaic_0001>

<bundles_post_ra>
// kernel: tpu_custom_call.1
= control target key start
LH: loop header
LB: loop body
LE: loop exit
PB: predicated region body
PF: predicated region fallthrough
CT: control target
= control target key end

     0   :  { %6 = vsyncpa [#allocation3], 0  ;;  %s815_s0 = inlined_call_operand.hbm [shape: f32[2,4,16,16], index: 0, kind: input, shape index: {}]   ;;  %s816_s1 = inlined_call_operand.hbm [shape: f32[2,2,16,16], index: 1, kind: output, shape index: {}]  }
   0x1   :  { %8 = vsyncpa [#allocation3 + $0x1], 0 }
   0x2   :  { %9 = vsyncpa [#allocation4], 0 }
   0x3   :  { %11 = vsyncpa [#allocation4 + $0x1], 0  ;;  %s593_s6 = smov 0   ;;  %s595_s7 = smov 0  }
   0x4   :  { %s597_s8 = smov 0   ;;  %s599_s9 = smov 0  }
   0x5   :  { %s601_s10 = smov 0   ;;  %s603_s11 = smov 0  }
   0x6 LB: > { %s356_s12 = sadd.s32 4294967295, %s573_s11   ;;  %s357_s13 = sadd.s32 4294967294, %s573_s11   ;;  %s573_s11 = sphi %s603_s11, %s17_s11   ;;  %s569_s10 = sphi %s601_s10, %s827_s10   ;;  %s565_s9 = sphi %s599_s9, %s826_s9   ;;  %s561_s8 = sphi %s597_s8, %s825_s8   ;;  %s557_s7 = sphi %s595_s7, %s824_s7   ;;  %s553_s6 = sphi %s593_s6, %s823_s6  }
   0x7   : > { %s36_s14 = sadd.s32 1, %s569_s10  ;;  %s47_s15 = sadd.s32 1, %s561_s8 }
   0x8   : > { %p38_p0 = scmp.ge.s32.totalorder %s36_s14, 2  ;;  %p54_p1 = scmp.ne.s32.totalorder %s561_s8, %s557_s7 }
   0x9   : > { %p55_p2 = scmp.eq.s32.totalorder %s573_s11, 0  ;;  %p60_p3 = scmp.ne.s32.totalorder %s557_s7, %s553_s6 }
   0xa   : > { %s829_s14 = smov (%p38_p0, %s36_s14), 0  ;;  %p61_p5 = scmp.eq.s32.totalorder %s356_s12, 0 }
   0xb   : > { %p634_p4 = por %p55_p2, %p54_p1  ;;  %s40_s17 = ssub.s32 %s569_s10, %s829_s14 }
   0xc   : > { %p86_p6 = scmp.eq.s32.totalorder %s356_s12, 1  ;;  %p45_p7 = scmp.eq.s32.totalorder %s40_s17, 0 }
   0xd   : > { %p640_p8 = por %p61_p5, %p60_p3  ;;  %p92_p10 = scmp.eq.s32.totalorder %s357_s13, 1 }
   0xe   : > { %p644_p9 = por %p86_p6, %p54_p1  ;;  %p409_p13 = scmp.lt.s32.totalorder %s573_s11, 2 }
   0xf   : > { %s649_s20 = scalar_select %p45_p7, %s561_s8, %s47_s15  }
  0x10   : > { %p651_p11 = por %p92_p10, %p60_p3  ;;  %s112_s22 = sand.u32 1, %s561_s8  }
  0x11   : > { %s360_s23 = sshll.u32 %s112_s22, 6  ;;  %s395_s24 = sshll.u32 %s569_s10, 10 }
  0x12   : > { %s127_s27 = scalar_lea.hbm %s815_s0, %s395_s24  ;;  %s116_s28 = scalar_lea.vmem [#allocation2], %s360_s23 }
  0x13   : > { %s128_s29 = sshll.u32 %s116_s28, 4  ;;  %p664_p0 = pnand %p409_p13, %p634_p4  ;;  %s129_s29 = int_to_ptr.vmem [resolvable:$true] %s128_s29 }
  0x14   : > { %p363_p1 = scmp.ge.s32.totalorder %s573_s11, 1  ;;  %s113_s2 = scalar_lea.sflag [#allocation3], %s112_s22 }
  0x15   : > { %p467_p2 = pneg %p664_p0  ;;  %s478_s3 = scalar_lea.vmem %s129_s29, 1024 }
  0x16   : > { %p479_p3 = scmp.ne.s32.totalorder %s129_s29, %s478_s3  ;;  %s575_s4 = smov [#allocation2]  }
  0x17   : > { %s483_s5 = sshll.u32 %s575_s4, 4  ;;  %s484_s5 = int_to_ptr.vmem [resolvable:$false] %s483_s5 }
  0x18   : > { %p481_p5 = pnand %p479_p3, %p467_p2  ;;  %s485_s12 = scalar_lea.vmem %s484_s5, 2048 }
  0x19   : > { %p486_p7 = scmp.lt.s32.totalorder %s129_s29, %s484_s5  ;;  %p487_p10 = scmp.lt.s32.totalorder %s485_s12, %s478_s3 }
  0x1a   : > { %p482_p6 = pneg %p481_p5 }
  0x1b   : > { %p488_p12 = por %p487_p10, %p486_p7 }
  0x1d   : > { %p489_p4 = pnand %p488_p12, %p482_p6 }
  0x1f   : > { %492 = shalt.err (!%p489_p4)
}
  0x20   : > { %s576_s13 = smov 128   ;;  %s577_s15 = smov 8  }
  0x21   : > { %404 = dma.hbm_to_vmem [thread:$0]  (!%p664_p0), %s127_s27, 1024, %s129_s29, %s113_s2, %s576_s13, %s576_s13, %s577_s15  }
  0x22   : > { %p136_p13 = scmp.lt.s32.totalorder %s573_s11, 3 }
  0x24   : > { %p137_p2 = pnand %p363_p1, %p136_p13 }
  0x25   : > { %s677_s16 = sand.u32 (!%p137_p2), 1, %s557_s7  }
  0x26   : > { %140 = sbr.rel (%p137_p2) target bundleno = 110 (0x6e), region = 24  ;;  %s364_s17 = sshll.u32 (!%p137_p2), %s677_s16, 6 }
  0x27   : > { %s143_s22 = scalar_lea.sflag (!%p137_p2), [#allocation3], %s677_s16  ;;  %s681_s23 = scalar_lea.vmem (!%p137_p2), [#allocation2], %s364_s17 }
  0x2b   : > { %544 = dma.done.wait (%p640_p8), %s143_s22, 1024  }
  0x2c   : > { %546 = vsyncadd (%p640_p8), %s143_s22, 4294966272  ;;  %s365_s24 = sshll.u32 %s677_s16, 5  ;;  %vm172_vm0 = vcmask 130048   ;;  %v578_v0 = vmov 0.0   ;;  %v579_v1 = vmov -inf   ;;  %v178_v2 = vld [vmem:[%s681_s23] sm:$0xff] }
  0x2d   : > { %s688_s25 = scalar_lea.vmem [#allocation5], %s365_s24  ;;  %v179_v3 = vld [vmem:[%s681_s23 + $0x8] sm:$0xff]  ;;  %v372_v12 = vld [vmem:[%s681_s23 + $0x10] sm:$0xff]  ;;  %v373_v13 = vld [vmem:[%s681_s23 + $0x18] sm:$0xff]  ;;  %s396_s18 = sshll.u32 %s565_s9, 9 }
  0x2e   : > { %173 = vst.msk [vmem:[%s688_s25] sm:$0xff] %vm172_vm0, %v578_v0  ;;  %174 = vst.msk [vmem:[%s688_s25 + $0x8] sm:$0xff] %vm172_vm0, %v578_v0  ;;  %v378_v22 = vld [vmem:[%s681_s23 + $0x20] sm:$0xff]  ;;  %v379_v23 = vld [vmem:[%s681_s23 + $0x28] sm:$0xff]  ;;  %s264_s26 = sshll.u32 %s688_s25, 4  ;;  %s761_s29 = scalar_lea.hbm %s816_s1, %s396_s18  ;;  %s763_s26 = int_to_ptr.vmem [resolvable:$true] %s264_s26 }
  0x2f   : > { %366 = vst.msk [vmem:[%s688_s25 + $0x10] sm:$0xff] %vm172_vm0, %v579_v1  ;;  %367 = vst.msk [vmem:[%s688_s25 + $0x18] sm:$0xff] %vm172_vm0, %v579_v1  ;;  %v384_v32 = vld [vmem:[%s681_s23 + $0x30] sm:$0xff]  ;;  %v385_v33 = vld [vmem:[%s681_s23 + $0x38] sm:$0xff]  ;;  %s249_s9 = scalar_lea.sflag [#allocation4], %s677_s16  ;;  %s493_s30 = scalar_lea.vmem %s763_s26, 512 }
  0x30   : > { %p494_p8 = scmp.ne.s32.totalorder %s763_s26, %s493_s30  ;;  %s580_s2 = smov [#allocation5]  }
  0x31   : > { %s497_s3 = sshll.u32 %s580_s2, 4  ;;  %s498_s3 = int_to_ptr.vmem [resolvable:$false] %s497_s3 }
  0x32   : > { %p495_p12 = pnand %p494_p8, %p644_p9  ;;  %s499_s4 = scalar_lea.vmem %s498_s3, 1024 }
  0x33   : > { %p500_p1 = scmp.lt.s32.totalorder %s763_s26, %s498_s3  ;;  %p501_p3 = scmp.lt.s32.totalorder %s499_s4, %s493_s30 }
  0x34   : > { %p496_p0 = pneg %p495_p12 }
  0x35   : > { %v180_v4 = vld [vmem:[%s688_s25] sm:$0xff]  ;;  %v181_v5 = vld [vmem:[%s688_s25 + $0x8] sm:$0xff]  ;;  %p502_p5 = por %p501_p3, %p500_p1 }
  0x36   : > { %v368_v6 = vld [vmem:[%s688_s25 + $0x10] sm:$0xff]  ;;  %v182_v7 = vadd.f32 %v180_v4, %v178_v2  ;;  %v183_v8 = vadd.f32 %v181_v5, %v179_v3  ;;  %v369_v10 = vld [vmem:[%s688_s25 + $0x18] sm:$0xff] }
  0x37   : > { %v190_v9 = vmax.f32 %v368_v6, %v178_v2  ;;  %v191_v11 = vmax.f32 %v369_v10, %v179_v3  ;;  %p503_p6 = pnand %p502_p5, %p496_p0 }
  0x38   : > { %185 = vst.msk [vmem:[%s688_s25] sm:$0xff] %vm172_vm0, %v182_v7  ;;  %186 = vst.msk [vmem:[%s688_s25 + $0x8] sm:$0xff] %vm172_vm0, %v183_v8 }
  0x39   : > { %370 = vst.msk [vmem:[%s688_s25 + $0x10] sm:$0xff] %vm172_vm0, %v190_v9  ;;  %371 = vst.msk [vmem:[%s688_s25 + $0x18] sm:$0xff] %vm172_vm0, %v191_v11 }
  0x3f   : > { %v197_v14 = vld [vmem:[%s688_s25] sm:$0xff]  ;;  %v198_v15 = vld [vmem:[%s688_s25 + $0x8] sm:$0xff] }
  0x40   : > { %v374_v16 = vld [vmem:[%s688_s25 + $0x10] sm:$0xff]  ;;  %v199_v17 = vadd.f32 %v372_v12, %v197_v14  ;;  %v200_v18 = vadd.f32 %v373_v13, %v198_v15  ;;  %v375_v20 = vld [vmem:[%s688_s25 + $0x18] sm:$0xff] }
  0x41   : > { %v205_v19 = vmax.f32 %v374_v16, %v372_v12  ;;  %v206_v21 = vmax.f32 %v375_v20, %v373_v13 }
  0x42   : > { %201 = vst.msk [vmem:[%s688_s25] sm:$0xff] %vm172_vm0, %v199_v17  ;;  %202 = vst.msk [vmem:[%s688_s25 + $0x8] sm:$0xff] %vm172_vm0, %v200_v18 }
  0x43   : > { %376 = vst.msk [vmem:[%s688_s25 + $0x10] sm:$0xff] %vm172_vm0, %v205_v19  ;;  %377 = vst.msk [vmem:[%s688_s25 + $0x18] sm:$0xff] %vm172_vm0, %v206_v21 }
  0x49   : > { %v212_v24 = vld [vmem:[%s688_s25] sm:$0xff]  ;;  %v213_v25 = vld [vmem:[%s688_s25 + $0x8] sm:$0xff] }
  0x4a   : > { %v380_v26 = vld [vmem:[%s688_s25 + $0x10] sm:$0xff]  ;;  %v214_v27 = vadd.f32 %v378_v22, %v212_v24  ;;  %v215_v28 = vadd.f32 %v379_v23, %v213_v25  ;;  %v381_v30 = vld [vmem:[%s688_s25 + $0x18] sm:$0xff] }
  0x4b   : > { %v220_v29 = vmax.f32 %v380_v26, %v378_v22  ;;  %v221_v31 = vmax.f32 %v381_v30, %v379_v23 }
  0x4c   : > { %216 = vst.msk [vmem:[%s688_s25] sm:$0xff] %vm172_vm0, %v214_v27  ;;  %217 = vst.msk [vmem:[%s688_s25 + $0x8] sm:$0xff] %vm172_vm0, %v215_v28 }
  0x4d   : > { %382 = vst.msk [vmem:[%s688_s25 + $0x10] sm:$0xff] %vm172_vm0, %v220_v29  ;;  %383 = vst.msk [vmem:[%s688_s25 + $0x18] sm:$0xff] %vm172_vm0, %v221_v31 }
  0x53   : > { %v227_v34 = vld [vmem:[%s688_s25] sm:$0xff]  ;;  %v228_v35 = vld [vmem:[%s688_s25 + $0x8] sm:$0xff] }
  0x54   : > { %v386_v36 = vld [vmem:[%s688_s25 + $0x10] sm:$0xff]  ;;  %v229_v37 = vadd.f32 %v384_v32, %v227_v34  ;;  %v230_v38 = vadd.f32 %v385_v33, %v228_v35  ;;  %v387_v40 = vld [vmem:[%s688_s25 + $0x18] sm:$0xff] }
  0x55   : > { %v235_v39 = vmax.f32 %v386_v36, %v384_v32  ;;  %v236_v41 = vmax.f32 %v387_v40, %v385_v33 }
  0x56   : > { %231 = vst.msk [vmem:[%s688_s25] sm:$0xff] %vm172_vm0, %v229_v37  ;;  %232 = vst.msk [vmem:[%s688_s25 + $0x8] sm:$0xff] %vm172_vm0, %v230_v38 }
  0x57   : > { %388 = vst.msk [vmem:[%s688_s25 + $0x10] sm:$0xff] %vm172_vm0, %v235_v39  ;;  %389 = vst.msk [vmem:[%s688_s25 + $0x18] sm:$0xff] %vm172_vm0, %v236_v41 }
  0x5d   : > { %v242_v42 = vld [vmem:[%s688_s25] sm:$0xff]  ;;  %v243_v43 = vld [vmem:[%s688_s25 + $0x8] sm:$0xff] }
  0x5e   : > { %v244_v44 = vmul.f32 0.25, %v242_v42  ;;  %v245_v45 = vmul.f32 0.25, %v243_v43 }
  0x60   : > { %246 = vst.msk [vmem:[%s688_s25] sm:$0xff] %vm172_vm0, %v244_v44  ;;  %247 = vst.msk [vmem:[%s688_s25 + $0x8] sm:$0xff] %vm172_vm0, %v245_v45 }
  0x61   : > { %506 = shalt.err (!%p503_p6)
}
  0x62   : > { %s507_s5 = scalar_lea.hbm %s761_s29, 512  ;;  %s511_s15 = scalar_lea.hbm %s816_s1, 1024 }
  0x63   : > { %p508_p7 = scmp.ne.s32.totalorder %s761_s29, %s507_s5  ;;  %p512_p13 = scmp.lt.s32.totalorder %s761_s29, %s816_s1 }
  0x64   : > { %p513_p2 = scmp.lt.s32.totalorder %s511_s15, %s507_s5 }
  0x65   : > { %p509_p10 = pnand %p508_p7, %p644_p9 }
  0x66   : > { %p514_p8 = por %p513_p2, %p512_p13 }
  0x67   : > { %p510_p4 = pneg %p509_p10 }
  0x69   : > { %p515_p12 = pnand %p514_p8, %p510_p4 }
  0x6b   : > { %518 = shalt.err (!%p515_p12)
}
  0x6c   : > { %s581_s23 = smov 128   ;;  %s582_s24 = smov 8  }
  0x6d   : > { %399 = dma.vmem_to_hbm [thread:$0]  (%p644_p9), %s763_s26, 512, %s761_s29, %s249_s9, %s581_s23, %s581_s23, %s582_s24  }
  0x6e PF: > { %s279_s25 = sand.u32 1, %s553_s6   ;;  %p822_p0 = scmp.ge.s32.totalorder %s573_s11, 2 }
  0x6f   : > { %s280_s18 = scalar_lea.sflag [#allocation4], %s279_s25 }
  0x70   : > { %p406_p1 = pnand %p822_p0, %p651_p11 }
  0x72   : > { %p407_p3 = pneg %p406_p1 }
  0x74   : > { %548 = dma.done.wait (%p407_p3), %s280_s18, 512  }
  0x75   : > { %550 = vsyncadd (%p407_p3), %s280_s18, 4294966784  ;;  %s17_s11 = sadd.s32 1, %s573_s11   ;;  %s823_s6 = smov %s557_s7 }
  0x76   : > { %p14_p5 = scmp.ge.s32.totalorder %s17_s11, 4   ;;  %s824_s7 = smov %s561_s8 }
  0x77   : > { %s825_s8 = smov %s649_s20  ;;  %s826_s9 = smov %s569_s10 }
  0x78   : > { %s827_s10 = smov %s829_s14  ;;  %16 = sbr.rel (!%p14_p5) target bundleno = 6 (0x6), region = 82 }
  0x7d   :  { %285 = vsyncpa [#allocation3], 1 }
  0x7e   :  { %287 = vsyncpa [#allocation3 + $0x1], 1 }
  0x7f   :  { %288 = vsyncpa [#allocation4], 1 }
  0x80   :  { %290 = vsyncpa [#allocation4 + $0x1], 1 }

</bundles_post_ra>
